<compile_context>
chip_gen: v5e
topology: v5e:2x2
jax: 0.10.0
libtpu: 0.0.40
codegen_flags: <defaults>
</compile_context>

<pallas_src>
import functools

import jax
import jax.numpy as jnp
from jax import lax
from jax.experimental import pallas as pl
from jax.experimental.pallas import tpu as pltpu


def _dloss_kernel(logits_ref, labels_ref, out_ref, acc_ref, *, n_total):
    i = pl.program_id(0)

    @pl.when(i == 0)
    def _():
        acc_ref[...] = jnp.zeros_like(acc_ref)

    x = logits_ref[...].astype(jnp.float32)             # (TN, C) f32
    labels = labels_ref[...]                             # (TN, 1) int32
    tn, c = x.shape

    # Numerically stable log-sum-exp over the class axis.
    m = jnp.max(x, axis=-1, keepdims=True)                               # (TN, 1)
    lse = m + jnp.log(jnp.sum(jnp.exp(x - m), axis=-1, keepdims=True))   # (TN, 1)

    # Gather the true-class logit via a one-hot mask built from an iota.
    classes = lax.broadcasted_iota(jnp.int32, (tn, c), 1)
    onehot = (classes == labels).astype(jnp.float32)                     # (TN, C)
    picked = jnp.sum(x * onehot, axis=-1, keepdims=True)                 # (TN, 1)

    per_row = lse - picked                                               # (TN, 1)

    # Mask out padded rows of the tail tile (their contents are garbage).
    row_ids = i * tn + lax.broadcasted_iota(jnp.int32, (tn, 1), 0)
    per_row = jnp.where(row_ids < n_total, per_row, 0.0)

    acc_ref[...] += jnp.sum(per_row, keepdims=True)                      # (1, 1)

    @pl.when(i == pl.num_programs(0) - 1)
    def _():
        out_ref[...] = acc_ref[...] * (1.0 / jnp.float32(n_total))


def _choose_tile_rows(n, c, itemsize):
    """Rows per tile, budgeted at ~4 MiB per pipeline buffer."""
    budget_bytes = 4 * 1024 * 1024
    tn = budget_bytes // max(1, c * itemsize)
    tn = max(8, min(tn, 4096))          # amortize ~0.35 us/step without huge tiles
    if tn >= n:
        return n                        # single full-extent block: always legal
    return max(8, (tn // 8) * 8)        # multiple of 8 sublanes


def dloss(y_pred: jax.Array, y_true: jax.Array) -> jax.Array:
    """Equivalent of DLoss.forward(y_pred, y_true) -> scalar mean CE loss."""
    n, c = y_pred.shape
    labels2d = y_true.astype(jnp.int32).reshape(n, 1)

    itemsize = jnp.dtype(y_pred.dtype).itemsize
    tn = _choose_tile_rows(n, c, itemsize)
    num_tiles = pl.cdiv(n, tn)

    kernel = functools.partial(_dloss_kernel, n_total=n)

    out = pl.pallas_call(
        kernel,
        out_shape=jax.ShapeDtypeStruct((1, 1), jnp.float32),
        grid_spec=pltpu.PrefetchScalarGridSpec(
            num_scalar_prefetch=0,
            grid=(num_tiles,),
            in_specs=[
                pl.BlockSpec((tn, c), lambda i: (i, 0)),   # logits tile
                pl.BlockSpec((tn, 1), lambda i: (i, 0)),   # labels tile
            ],
            out_specs=pl.BlockSpec((1, 1), lambda i: (0, 0)),
            scratch_shapes=[pltpu.VMEM((1, 1), jnp.float32)],
        ),
        compiler_params=pltpu.CompilerParams(
            dimension_semantics=("arbitrary",),
            vmem_limit_bytes=32 * 1024 * 1024,
        ),
        cost_estimate=pl.CostEstimate(
            flops=5 * n * c,
            transcendentals=n * c,
            bytes_accessed=n * c * itemsize + n * 4 + 4,
        ),
    )(y_pred, labels2d)   # NOTE: native dtype passed through (no f32 HBM copy)
    return out[0, 0]


if __name__ == "__main__":
    key = jax.random.PRNGKey(0)
    k1, k2 = jax.random.split(key)

    N, C = 8, 16  # batch of 8 samples, 16 classes
    y_pred = jax.random.normal(k1, (N, C), dtype=jnp.float32)
    y_true = jax.random.randint(k2, (N,), 0, C, dtype=jnp.int32)

    loss = dloss(y_pred, y_true)
    loss = jax.block_until_ready(loss)

    # reference (plain JAX) check of CrossEntropyLoss semantics
    ref = jnp.mean(
        jax.nn.logsumexp(y_pred, axis=-1)
        - jnp.take_along_axis(y_pred, y_true[:, None], axis=-1)[:, 0]
    )
    assert jnp.allclose(loss, ref, atol=1e-5, rtol=1e-5), (loss, ref)

    print("KERNEL_OK")
</pallas_src>

<mosaic_0001>
module attributes {stable_mosaic.version = 11 : i64} {
  func.func @_dloss_kernel(%arg0: i32, %arg1: memref<8x16xf32, #tpu.memory_space<vmem>>, %arg2: memref<8x1xi32, #tpu.memory_space<vmem>>, %arg3: memref<1x1xf32, #tpu.memory_space<vmem>>, %arg4: memref<1x1xf32, #tpu.memory_space<vmem>>) attributes {dimension_semantics = [#tpu.dimension_semantics<arbitrary>], iteration_bounds = array<i64: 1>, scalar_prefetch = 0 : i64, scratch_operands = 1 : i64, tpu.core_type = #tpu.core_type<tc>, window_params = [{transform_indices = @transform_0, window_bounds = array<i64: 8, 16>}, {transform_indices = @transform_1, window_bounds = array<i64: 8, 1>}, {pipeline_mode = #tpu.pipeline_mode<synchronous>, transform_indices = @transform_2, window_bounds = array<i64: 1, 1>}]} {
    %c0_i32 = arith.constant 0 : i32
    %0 = arith.cmpi eq, %arg0, %c0_i32 : i32
    %1 = arith.extui %0 : i1 to i32
    %c0_i32_0 = arith.constant 0 : i32
    %2 = arith.cmpi ne, %1, %c0_i32_0 : i32
    scf.if %2 {
      %cst_15 = arith.constant 0.000000e+00 : f32
      %42 = vector.broadcast %cst_15 : f32 to vector<1x1xf32>
      %c0_16 = arith.constant 0 : index
      %c0_17 = arith.constant 0 : index
      %43 = vector.load %arg4[%c0_16, %c0_17] : memref<1x1xf32, #tpu.memory_space<vmem>>, vector<1x1xf32>
      tpu.vector_store %arg4[%c0_16, %c0_17], %42 {strides = array<i32>} : memref<1x1xf32, #tpu.memory_space<vmem>>, vector<1x1xf32>,
    } else {
    }
    %c0 = arith.constant 0 : index
    %c0_1 = arith.constant 0 : index
    %3 = vector.load %arg1[%c0, %c0_1] : memref<8x16xf32, #tpu.memory_space<vmem>>, vector<8x16xf32>
    %c0_2 = arith.constant 0 : index
    %c0_3 = arith.constant 0 : index
    %4 = vector.load %arg2[%c0_2, %c0_3] : memref<8x1xi32, #tpu.memory_space<vmem>>, vector<8x1xi32>
    %cst = arith.constant dense<0xFF800000> : vector<8xf32>
    %5 = vector.multi_reduction <maximumf>, %3, %cst [1] : vector<8x16xf32> to vector<8xf32>
    %6 = vector.shape_cast %5 : vector<8xf32> to vector<8x1xf32>
    %7 = vector.broadcast %6 : vector<8x1xf32> to vector<8x16xf32>
    %8 = arith.subf %3, %7 : vector<8x16xf32>
    %9 = math.exp %8 : vector<8x16xf32>
    %cst_4 = arith.constant dense<0.000000e+00> : vector<8xf32>
    %10 = vector.multi_reduction <add>, %9, %cst_4 [1] : vector<8x16xf32> to vector<8xf32>
    %11 = vector.shape_cast %10 : vector<8xf32> to vector<8x1xf32>
    %12 = math.log %11 : vector<8x1xf32>
    %13 = arith.addf %6, %12 : vector<8x1xf32>
    %14 = tpu.iota {dimensions = array<i32: 1>} : vector<8x16xi32>
    %15 = vector.broadcast %4 : vector<8x1xi32> to vector<8x16xi32>
    %16 = arith.cmpi eq, %14, %15 : vector<8x16xi32>
    %17 = arith.extui %16 : vector<8x16xi1> to vector<8x16xi32>
    %18 = arith.sitofp %17 : vector<8x16xi32> to vector<8x16xf32>
    %19 = arith.mulf %3, %18 : vector<8x16xf32>
    %cst_5 = arith.constant dense<0.000000e+00> : vector<8xf32>
    %20 = vector.multi_reduction <add>, %19, %cst_5 [1] : vector<8x16xf32> to vector<8xf32>
    %21 = vector.shape_cast %20 : vector<8xf32> to vector<8x1xf32>
    %22 = arith.subf %13, %21 : vector<8x1xf32>
    %c8_i32 = arith.constant 8 : i32
    %23 = arith.muli %arg0, %c8_i32 : i32
    %24 = tpu.iota {dimensions = array<i32: 0>} : vector<8x1xi32>
    %25 = vector.broadcast %23 : i32 to vector<8x1xi32>
    %26 = arith.addi %25, %24 : vector<8x1xi32>
    %c8_i32_6 = arith.constant 8 : i32
    %27 = vector.broadcast %c8_i32_6 : i32 to vector<8x1xi32>
    %28 = arith.cmpi slt, %26, %27 : vector<8x1xi32>
    %cst_7 = arith.constant 0.000000e+00 : f32
    %29 = vector.broadcast %cst_7 : f32 to vector<8x1xf32>
    %30 = arith.select %28, %22, %29 : vector<8x1xi1>, vector<8x1xf32>
    %c0_8 = arith.constant 0 : index
    %c0_9 = arith.constant 0 : index
    %31 = vector.load %arg4[%c0_8, %c0_9] : memref<1x1xf32, #tpu.memory_space<vmem>>, vector<1x1xf32>
    %32 = vector.shape_cast %30 : vector<8x1xf32> to vector<1x8x1xf32>
    %cst_10 = arith.constant dense<0.000000e+00> : vector<1xf32>
    %33 = vector.multi_reduction <add>, %32, %cst_10 [1, 2] : vector<1x8x1xf32> to vector<1xf32>
    %34 = vector.shape_cast %33 : vector<1xf32> to vector<1x1x1xf32>
    %35 = vector.extract %34[0, 0, 0] : f32 from vector<1x1x1xf32>
    %36 = vector.broadcast %35 : f32 to vector<1x1xf32>
    %37 = arith.addf %31, %36 : vector<1x1xf32>
    %c0_11 = arith.constant 0 : index
    %c0_12 = arith.constant 0 : index
    %38 = vector.load %arg4[%c0_11, %c0_12] : memref<1x1xf32, #tpu.memory_space<vmem>>, vector<1x1xf32>
    tpu.vector_store %arg4[%c0_11, %c0_12], %37 {strides = array<i32>} : memref<1x1xf32, #tpu.memory_space<vmem>>, vector<1x1xf32>,
    %c0_i32_13 = arith.constant 0 : i32
    %39 = arith.cmpi eq, %arg0, %c0_i32_13 : i32
    %40 = arith.extui %39 : i1 to i32
    %c0_i32_14 = arith.constant 0 : i32
    %41 = arith.cmpi ne, %40, %c0_i32_14 : i32
    scf.if %41 {
      %c0_15 = arith.constant 0 : index
      %c0_16 = arith.constant 0 : index
      %42 = vector.load %arg4[%c0_15, %c0_16] : memref<1x1xf32, #tpu.memory_space<vmem>>, vector<1x1xf32>
      %cst_17 = arith.constant 1.000000e+00 : f32
      %cst_18 = arith.constant 8.000000e+00 : f32
      %43 = arith.divf %cst_17, %cst_18 : f32
      %44 = vector.broadcast %43 : f32 to vector<1x1xf32>
      %45 = arith.mulf %42, %44 : vector<1x1xf32>
      %c0_19 = arith.constant 0 : index
      %c0_20 = arith.constant 0 : index
      %46 = vector.load %arg3[%c0_19, %c0_20] : memref<1x1xf32, #tpu.memory_space<vmem>>, vector<1x1xf32>
      tpu.vector_store %arg3[%c0_19, %c0_20], %45 {strides = array<i32>} : memref<1x1xf32, #tpu.memory_space<vmem>>, vector<1x1xf32>,
    } else {
    }
    return
  }
  func.func @transform_0(%arg0: i32) -> (i32, i32) {
    %c0_i32 = arith.constant 0 : i32
    %c0_i32_0 = arith.constant 0 : i32
    return %arg0, %c0_i32 : i32, i32
  }
  func.func @transform_1(%arg0: i32) -> (i32, i32) {
    %c0_i32 = arith.constant 0 : i32
    %c0_i32_0 = arith.constant 0 : i32
    return %arg0, %c0_i32 : i32, i32
  }
  func.func @transform_2(%arg0: i32) -> (i32, i32) {
    %c0_i32 = arith.constant 0 : i32
    %c0_i32_0 = arith.constant 0 : i32
    %c0_i32_1 = arith.constant 0 : i32
    return %c0_i32, %c0_i32_0 : i32, i32
  }
}

</mosaic_0001>

<bundles_post_ra>
// kernel: tpu_custom_call.1
= control target key start
LH: loop header
LB: loop body
LE: loop exit
PB: predicated region body
PF: predicated region fallthrough
CT: control target
= control target key end

     0   :  { %vm20_vm0 = vcmask 130048   ;;  %s161_s0 = inlined_call_operand.vmem [shape: f32[8,16], index: 0, kind: input, shape index: {}]   ;;  %s162_s1 = inlined_call_operand.vmem [shape: s32[8,1], index: 1, kind: input, shape index: {}]   ;;  %s163_s2 = inlined_call_operand.hbm [shape: f32[1,1], index: 2, kind: output, shape index: {}]  }
   0x1   :  { %v18_v0 = vld [vmem:[%s161_s0] sm:$0xff] }
   0x2   :  { %7 = vsyncpa [#allocation4], 0  ;;  %v21_v1 = vsel %vm20_vm0, %v18_v0, -inf  ;;  %v128_v2 = vmov 0   ;;  %v19_v3 = vld [vmem:[%s162_s1] sm:$0xff]  ;;  %vm16_vm1 = vcmask 0   ;;  %v33_v10 = vlaneseq }
   0x3   :  { %97 = vset.pattern.permute.xlu0 %v128_v2  ;;  %v129_v4 = vmov 0.0   ;;  %vm54_vm3 = vcmask 7168   ;;  %s130_s1 = smov [#allocation3]   ;;  %s82_s16 = sshll.u32 %s163_s2, 4  ;;  %s83_s16 = int_to_ptr.hbm [resolvable:$true] %s82_s16 }
   0x4   :  { %22 = vmax.xlane.f32.xlu0 %v21_v1  ;;  %17 = vst.msk [vmem:[#allocation2] sm:$0x1] %vm16_vm1, %v129_v4  ;;  %v34_v11 = vand.u32 127, %v33_v10  ;;  %s80_s13 = sshll.u32 %s130_s1, 4  ;;  %s81_s13 = int_to_ptr.vmem [resolvable:$true] %s80_s13 }
   0xb   :  { %v53_v30 = vld [vmem:[#allocation2] sm:$0x1] }
  0x18   :  { %36 = vperm.xlu0 %97, %v19_v3  }
  0x77   :  { %v23_v5 = vpop.xlane.xlu0 %22 }
  0x78   :  { %v24_v6 = vsub.f32 %v18_v0, %v23_v5 }
  0x7a   :  { %v25_v7 = vmul.f32 1.442695, %v24_v6 }
  0x7c   :  { %98 = vpow2.f32 %v25_v7 }
  0x82   :  { %v99_v8 = vpop.eup %98 }
  0x83   :  { %v27_v9 = vsel %vm20_vm0, %v99_v8, 0.0 }
  0x84   :  { %28 = vadd.xlane.f32.xlu1 %v27_v9 }
  0x8a   :  { %v37_v12 = vpop.permute.xlu0 %36 }
  0x8b   :  { %vm38_vm2 = vcmp.eq.s32.totalorder %v34_v11, %v37_v12 }
  0x8c   :  { %v91_v13 = vsel %vm38_vm2, 1.0, %v129_v4 }
  0x8d   :  { %v41_v14 = vmul.f32 %v91_v13, %v18_v0 }
  0x8f   :  { %v42_v15 = vsel %vm20_vm0, %v41_v14, 0.0 }
  0x90   :  { %43 = vadd.xlane.f32.xlu1 %v42_v15 }
  0xf7   :  { %v29_v16 = vpop.xlane.xlu1 %28 }
  0xf8   :  { %100 = vlog2.f32 %v29_v16 }
  0xfe   :  { %v101_v17 = vpop.eup %100 }
  0xff   :  { %v31_v18 = vmul.f32 0.6931472, %v101_v17 }
 0x101   :  { %v32_v19 = vadd.f32 %v31_v18, %v23_v5 }
 0x103   :  { %v44_v20 = vpop.xlane.xlu1 %43 }
 0x104   :  { %v45_v21 = vsub.f32 %v32_v19, %v44_v20 }
 0x106   :  { %v55_v22 = vsel %vm54_vm3, %v45_v21, 0.0 }
 0x107   :  { %56 = vadd.xlane.f32.xlu2 %v55_v22 }
 0x17a   :  { %v57_v23 = vpop.xlane.xlu2 %56 }
 0x17b   :  { %v58_v24 = vrot.slane %v57_v23, 4 }
 0x17d   :  { %v59_v25 = vadd.f32 %v58_v24, %v57_v23 }
 0x17f   :  { %v60_v26 = vrot.slane %v59_v25, 2 }
 0x181   :  { %v61_v27 = vadd.f32 %v60_v26, %v59_v25 }
 0x183   :  { %v62_v28 = vrot.slane %v61_v27, 1 }
 0x185   :  { %v63_v29 = vadd.f32 %v62_v28, %v61_v27 }
 0x187   :  { %92 = vpush %v63_v29 }
 0x1b8   :  { %s93_s0 = spop %92 }
 0x1b9   :  { %v65_v31 = vstv %s93_s0 }
 0x1ba   :  { %v66_v32 = vadd.f32 %v65_v31, %v53_v30 }
 0x1bc   :  { %68 = vst.msk [vmem:[#allocation2] sm:$0x1] %vm16_vm1, %v66_v32 }
 0x1c3   :  { %v72_v33 = vld [vmem:[#allocation2] sm:$0x1] }
 0x1c4   :  { %v73_v34 = vmul.f32 0.125, %v72_v33 }
 0x1c6   :  { %74 = vst.msk [vmem:[#allocation3] sm:$0x1] %vm16_vm1, %v73_v34 }
 0x1c7   :  { %85 = dma.vmem_to_hbm [thread:$0]  %s81_s13, 16, %s83_s16, [#allocation4]  }
 0x1c8   :  { %126 = dma.done.wait [#allocation4], 16  }
 0x1c9   :  { %127 = vsyncadd [#allocation4], 4294967280 }
 0x1ca   :  { %90 = vsyncpa [#allocation4], 1 }

</bundles_post_ra>
